<compile_context>
chip_gen: v7x
topology: tpu7x:2x2x1
jax: 0.10.0
libtpu: 0.0.40
codegen_flags: <defaults>
</compile_context>

<pallas_src>
import functools

import jax
import jax.numpy as jnp
from jax.experimental import pallas as pl
from jax.experimental.pallas import tpu as pltpu


def _round_up(n, m):
    return ((n + m - 1) // m) * m


def _gcn_kernel(alpha_ref, adj_ref, x_ref, proj_ref, o_ref, acc_ref,
                *, n, tk, mask_cols, x_resident):
    """One (row-tile i, contraction-tile k) grid step.

    adj_ref : (tm, tk)           tile of the dense adjacency
    x_ref   : (Kpad, Dfeat) resident features, or (tk, Dfeat) per-k block
    proj_ref: (Dfeat, Dout_pad)  W^T (or identity if features were pre-projected)
    o_ref   : (tm, Dout_pad)     output tile (revisited across k)
    acc_ref : (tm, Dfeat)        f32 accumulator for adj @ feats
    """
    k = pl.program_id(1)

    @pl.when(k == 0)
    def _():
        acc_ref[...] = jnp.zeros_like(acc_ref)

    adj_blk = adj_ref[...]
    if mask_cols:
        # Ragged last contraction tile: zero out-of-range adjacency columns
        # (their matching feature rows are zero-padded, so contribution is 0
        # and no garbage/NaN from the unspecified edge region can leak in).
        col = k * tk + jax.lax.broadcasted_iota(jnp.int32, adj_blk.shape, 1)
        adj_blk = jnp.where(col < n, adj_blk, jnp.zeros_like(adj_blk))

    if x_resident:
        start = pl.multiple_of(k * tk, tk)
        feats = x_ref[pl.ds(start, tk), :]
    else:
        feats = x_ref[...]

    # Aggregate on the MXU with an f32 accumulator.
    acc_ref[...] += jnp.dot(adj_blk, feats, preferred_element_type=jnp.float32)

    @pl.when(k == pl.num_programs(1) - 1)
    def _():
        # Fused projection + PReLU on the finished row tile.
        h = jnp.dot(acc_ref[...], proj_ref[...],
                    preferred_element_type=jnp.float32)
        alpha = alpha_ref[0]
        o_ref[...] = jnp.where(h >= 0.0, h, alpha * h).astype(o_ref.dtype)


@functools.partial(jax.jit, static_argnames=("tm", "tk", "compute_dtype"))
def gcn_forward(x, adj, w, prelu_a, *, tm=256, tk=4096, compute_dtype=None):
    """GCNLayer forward: PReLU((adj @ x) @ W.T).

    x: [N, Din] f32, adj: [N, N] dense, w: [Dout, Din] (nn.Linear layout),
    prelu_a: PReLU slope (scalar or [1]).  Returns [N, Dout] float32.
    compute_dtype: optional narrower dtype (e.g. jnp.bfloat16) for the
    bandwidth-dominant adjacency / feature streams; accumulation stays f32.
    """
    N, Din = x.shape
    Dout = w.shape[0]
    assert adj.shape == (N, N) and w.shape == (Dout, Din)

    cdtype = jnp.dtype(compute_dtype) if compute_dtype is not None else jnp.dtype(jnp.float32)
    w32 = w.astype(jnp.float32)
    prelu_a = jnp.asarray(prelu_a, jnp.float32).reshape((1,))

    # Matmul association: always aggregate the *narrower* feature matrix.
    if Dout < Din:
        # adj @ (x @ W^T): pre-project (cheap, N*Din*Dout) in the wrapper.
        feats = jnp.dot(x.astype(jnp.float32), w32.T, precision="highest")
        proj = jnp.eye(Dout, dtype=jnp.float32)
    else:
        feats = x.astype(jnp.float32)
        proj = w32.T                                    # [Din, Dout]
    Dfeat = feats.shape[1]

    # Lane-dense output: pad Dout up to a multiple of 128 with zero columns.
    Dout_pad = max(_round_up(Dout, 128), 128)
    if Dout_pad != Dout:
        proj = jnp.pad(proj, ((0, 0), (0, Dout_pad - Dout)))

    # Tile selection: tm multiple of 8, tk multiple of 128 (large, to amortize
    # per-grid-step overhead); both clipped to the problem size so small
    # problems become a single grid step.
    tm = _round_up(min(tm, _round_up(N, 8)), 8)
    tk = _round_up(min(tk, _round_up(N, 128)), 128)

    itemsize = cdtype.itemsize

    def _plan(tk_):
        x_rows_ = _round_up(N, tk_)
        x_resident_ = x_rows_ * Dfeat * itemsize <= 4 * 2**20
        x_bytes = (x_rows_ if x_resident_ else 2 * tk_) * Dfeat * itemsize
        est_ = (2 * tm * tk_ * itemsize        # adj double-buffer (dominant)
                + x_bytes                      # features (resident or 2 bufs)
                + 2 * Dfeat * Dout_pad * 4     # projection (resident)
                + 2 * tm * Dout_pad * 4        # output tile double-buffer
                + tm * Dfeat * 4)              # f32 accumulator scratch
        return est_, x_resident_, x_rows_

    est, x_resident, x_rows = _plan(tk)
    while est > 20 * 2**20 and tk > 512:       # shrink tk if working set too big
        tk = max(512, _round_up(tk // 2, 128))
        est, x_resident, x_rows = _plan(tk)

    # Raise the scoped VMEM limit (16/32 MiB defaults) but stay well under the
    # 64 MiB physical VMEM of a v7x TensorCore.
    vmem_limit = int(min(max(2 * est, 32 * 2**20), 48 * 2**20))

    # Zero-pad only the (cheap) feature matrix so every contraction slice is
    # in-bounds and exact; the (huge) adjacency is streamed unpadded.
    if x_rows != N:
        feats = jnp.pad(feats, ((0, x_rows - N), (0, 0)))
    feats = feats.astype(cdtype)
    adj_c = adj.astype(cdtype)

    grid = (pl.cdiv(N, tm), pl.cdiv(N, tk))
    mask_cols = (N % tk) != 0

    if x_resident:
        x_spec = pl.BlockSpec((x_rows, Dfeat), lambda i, k, a: (0, 0))
    else:
        x_spec = pl.BlockSpec((tk, Dfeat), lambda i, k, a: (k, 0))

    kernel = functools.partial(
        _gcn_kernel, n=N, tk=tk, mask_cols=mask_cols, x_resident=x_resident)

    out = pl.pallas_call(
        kernel,
        out_shape=jax.ShapeDtypeStruct((N, Dout_pad), jnp.float32),
        grid_spec=pltpu.PrefetchScalarGridSpec(
            num_scalar_prefetch=1,  # PReLU slope lands in SMEM
            grid=grid,
            in_specs=[
                pl.BlockSpec((tm, tk), lambda i, k, a: (i, k)),          # adj
                x_spec,                                                   # feats
                pl.BlockSpec((Dfeat, Dout_pad), lambda i, k, a: (0, 0)),  # proj
            ],
            out_specs=pl.BlockSpec((tm, Dout_pad), lambda i, k, a: (i, 0)),
            scratch_shapes=[pltpu.VMEM((tm, Dfeat), jnp.float32)],
        ),
        compiler_params=pltpu.CompilerParams(
            dimension_semantics=("parallel", "arbitrary"),
            vmem_limit_bytes=vmem_limit,
        ),
    )(prelu_a, adj_c, feats, proj)

    return out[:, :Dout] if Dout_pad != Dout else out


if __name__ == "__main__":
    def make_inputs(key, N, Din, Dout):
        k_adj, k_x, k_w = jax.random.split(key, 3)
        # Dense stand-in for the sparse normalized adjacency used with
        # torch.spmm: symmetric random graph + self-loops, row-normalized.
        a = (jax.random.uniform(k_adj, (N, N)) < 0.05).astype(jnp.float32)
        a = jnp.maximum(a, a.T) + jnp.eye(N, dtype=jnp.float32)
        adj = a / jnp.sum(a, axis=1, keepdims=True)
        x = jax.random.normal(k_x, (N, Din), jnp.float32)
        bound = (6.0 / (Din + Dout)) ** 0.5               # xavier_uniform_
        w = jax.random.uniform(k_w, (Dout, Din), jnp.float32, -bound, bound)
        return x, adj, w

    def ref_fwd(x, adj, w, alpha=0.25):
        h = jnp.dot(jnp.dot(adj, x, precision="highest"), w.T, precision="highest")
        return jnp.where(h >= 0.0, h, alpha * h)

    prelu_a = jnp.full((1,), 0.25, jnp.float32)           # nn.PReLU() default
    key = jax.random.PRNGKey(0)
    k1, k2 = jax.random.split(key)

    # Config 1: aligned shapes, aggregate-then-project path (Din <= Dout),
    # single grid step.
    x1, adj1, w1 = make_inputs(k1, 128, 32, 64)
    out1 = jax.block_until_ready(gcn_forward(x1, adj1, w1, prelu_a))
    assert out1.shape == (128, 64)
    assert jnp.allclose(out1, ref_fwd(x1, adj1, w1), atol=2e-3, rtol=2e-3)

    # Config 2: ragged N (in-kernel edge masking) + pre-projection (Dout < Din).
    x2, adj2, w2 = make_inputs(k2, 200, 96, 48)
    out2 = jax.block_until_ready(gcn_forward(x2, adj2, w2, prelu_a))
    assert out2.shape == (200, 48)
    assert jnp.allclose(out2, ref_fwd(x2, adj2, w2), atol=2e-3, rtol=2e-3)

    # Config 2b: force tiny tiles so multi-tile accumulation, ragged adj edge
    # masking and ragged output-row clipping are all exercised.
    out2b = jax.block_until_ready(gcn_forward(x2, adj2, w2, prelu_a, tm=64, tk=128))
    assert jnp.allclose(out2b, ref_fwd(x2, adj2, w2), atol=2e-3, rtol=2e-3)

    # Config 3: bf16 adjacency/feature streams (halves HBM traffic), f32 acc.
    out3 = jax.block_until_ready(
        gcn_forward(x1, adj1, w1, prelu_a, compute_dtype=jnp.bfloat16))
    assert jnp.allclose(out3, ref_fwd(x1, adj1, w1), atol=5e-2, rtol=5e-2)

    print("KERNEL_OK")
</pallas_src>

<mosaic_0001>
module attributes {stable_mosaic.version = 11 : i64} {
  func.func @_gcn_kernel(%arg0: i32, %arg1: i32, %arg2: memref<1xf32, #tpu.memory_space<smem>>, %arg3: memref<128x128xf32, #tpu.memory_space<vmem>>, %arg4: memref<128x32xf32, #tpu.memory_space<vmem>>, %arg5: memref<32x128xf32, #tpu.memory_space<vmem>>, %arg6: memref<128x128xf32, #tpu.memory_space<vmem>>, %arg7: memref<128x32xf32, #tpu.memory_space<vmem>>) attributes {dimension_semantics = [#tpu.dimension_semantics<parallel>, #tpu.dimension_semantics<arbitrary>], iteration_bounds = array<i64: 1, 1>, scalar_prefetch = 1 : i64, scratch_operands = 1 : i64, tpu.core_type = #tpu.core_type<tc>, window_params = [{transform_indices = @transform_0, window_bounds = array<i64: 128, 128>}, {pipeline_mode = #tpu.pipeline_mode<synchronous>, transform_indices = @transform_1, window_bounds = array<i64: 128, 32>}, {pipeline_mode = #tpu.pipeline_mode<synchronous>, transform_indices = @transform_2, window_bounds = array<i64: 32, 128>}, {transform_indices = @transform_3, window_bounds = array<i64: 128, 128>}]} {
    %c0_i32 = arith.constant 0 : i32
    %0 = arith.cmpi eq, %arg1, %c0_i32 : i32
    %1 = arith.extui %0 : i1 to i32
    %c0_i32_0 = arith.constant 0 : i32
    %2 = arith.cmpi ne, %1, %c0_i32_0 : i32
    scf.if %2 {
      %cst_9 = arith.constant 0.000000e+00 : f32
      %15 = vector.broadcast %cst_9 : f32 to vector<128x32xf32>
      %c0_10 = arith.constant 0 : index
      %c0_11 = arith.constant 0 : index
      %16 = vector.load %arg7[%c0_10, %c0_11] : memref<128x32xf32, #tpu.memory_space<vmem>>, vector<128x32xf32>
      tpu.vector_store %arg7[%c0_10, %c0_11], %15 {strides = array<i32>} : memref<128x32xf32, #tpu.memory_space<vmem>>, vector<128x32xf32>,
    } else {
    }
    %c0 = arith.constant 0 : index
    %c0_1 = arith.constant 0 : index
    %3 = vector.load %arg3[%c0, %c0_1] : memref<128x128xf32, #tpu.memory_space<vmem>>, vector<128x128xf32>
    %c128_i32 = arith.constant 128 : i32
    %4 = arith.muli %arg1, %c128_i32 : i32
    %5 = tpu.assume_multiple %4, 128 : i32
    %6 = arith.index_cast %5 : i32 to index
    %c0_2 = arith.constant 0 : index
    %7 = vector.load %arg4[%6, %c0_2] : memref<128x32xf32, #tpu.memory_space<vmem>>, vector<128x32xf32>
    %c0_3 = arith.constant 0 : index
    %c0_4 = arith.constant 0 : index
    %8 = vector.load %arg7[%c0_3, %c0_4] : memref<128x32xf32, #tpu.memory_space<vmem>>, vector<128x32xf32>
    %cst = arith.constant dense<0.000000e+00> : vector<128x32xf32>
    %9 = tpu.matmul %3, %7, %cst {dimension_numbers = #tpu.dot_dimension_numbers<[1], [0], [0], [1], [0, 0, 1, 1], [], []>} : vector<128x128xf32>, vector<128x32xf32>, vector<128x32xf32> -> vector<128x32xf32>
    %10 = arith.addf %8, %9 : vector<128x32xf32>
    %c0_5 = arith.constant 0 : index
    %c0_6 = arith.constant 0 : index
    %11 = vector.load %arg7[%c0_5, %c0_6] : memref<128x32xf32, #tpu.memory_space<vmem>>, vector<128x32xf32>
    tpu.vector_store %arg7[%c0_5, %c0_6], %10 {strides = array<i32>} : memref<128x32xf32, #tpu.memory_space<vmem>>, vector<128x32xf32>,
    %c0_i32_7 = arith.constant 0 : i32
    %12 = arith.cmpi eq, %arg1, %c0_i32_7 : i32
    %13 = arith.extui %12 : i1 to i32
    %c0_i32_8 = arith.constant 0 : i32
    %14 = arith.cmpi ne, %13, %c0_i32_8 : i32
    scf.if %14 {
      %c0_9 = arith.constant 0 : index
      %c0_10 = arith.constant 0 : index
      %15 = vector.load %arg7[%c0_9, %c0_10] : memref<128x32xf32, #tpu.memory_space<vmem>>, vector<128x32xf32>
      %c0_11 = arith.constant 0 : index
      %c0_12 = arith.constant 0 : index
      %16 = vector.load %arg5[%c0_11, %c0_12] : memref<32x128xf32, #tpu.memory_space<vmem>>, vector<32x128xf32>
      %cst_13 = arith.constant dense<0.000000e+00> : vector<128x128xf32>
      %17 = tpu.matmul %15, %16, %cst_13 {dimension_numbers = #tpu.dot_dimension_numbers<[1], [0], [0], [1], [0, 0, 1, 1], [], []>} : vector<128x32xf32>, vector<32x128xf32>, vector<128x128xf32> -> vector<128x128xf32>
      %c0_14 = arith.constant 0 : index
      %18 = memref.load %arg2[%c0_14] : memref<1xf32, #tpu.memory_space<smem>>
      %cst_15 = arith.constant 0.000000e+00 : f32
      %19 = vector.broadcast %cst_15 : f32 to vector<128x128xf32>
      %20 = arith.cmpf oge, %17, %19 : vector<128x128xf32>
      %21 = vector.broadcast %18 : f32 to vector<128x128xf32>
      %22 = arith.mulf %21, %17 : vector<128x128xf32>
      %23 = arith.select %20, %17, %22 : vector<128x128xi1>, vector<128x128xf32>
      %c0_16 = arith.constant 0 : index
      %c0_17 = arith.constant 0 : index
      %24 = vector.load %arg6[%c0_16, %c0_17] : memref<128x128xf32, #tpu.memory_space<vmem>>, vector<128x128xf32>
      tpu.vector_store %arg6[%c0_16, %c0_17], %23 {strides = array<i32>} : memref<128x128xf32, #tpu.memory_space<vmem>>, vector<128x128xf32>,
    } else {
    }
    return
  }
  func.func @transform_0(%arg0: i32, %arg1: i32, %arg2: memref<1xf32, #tpu.memory_space<smem>>) -> (i32, i32) {
    %c0_i32 = arith.constant 0 : i32
    return %arg0, %arg1 : i32, i32
  }
  func.func @transform_1(%arg0: i32, %arg1: i32, %arg2: memref<1xf32, #tpu.memory_space<smem>>) -> (i32, i32) {
    %c0_i32 = arith.constant 0 : i32
    %c0_i32_0 = arith.constant 0 : i32
    %c0_i32_1 = arith.constant 0 : i32
    return %c0_i32, %c0_i32_0 : i32, i32
  }
  func.func @transform_2(%arg0: i32, %arg1: i32, %arg2: memref<1xf32, #tpu.memory_space<smem>>) -> (i32, i32) {
    %c0_i32 = arith.constant 0 : i32
    %c0_i32_0 = arith.constant 0 : i32
    %c0_i32_1 = arith.constant 0 : i32
    return %c0_i32, %c0_i32_0 : i32, i32
  }
  func.func @transform_3(%arg0: i32, %arg1: i32, %arg2: memref<1xf32, #tpu.memory_space<smem>>) -> (i32, i32) {
    %c0_i32 = arith.constant 0 : i32
    %c0_i32_0 = arith.constant 0 : i32
    return %arg0, %c0_i32 : i32, i32
  }
}

</mosaic_0001>

<bundles_post_ra>
// kernel: gcn_forward.1
= control target key start
LH: loop header
LB: loop body
LE: loop exit
PB: predicated region body
PF: predicated region fallthrough
CT: control target
= control target key end

     0   :  { %vm20_vm0 = vcmask 261120   ;;  %v748_v3 = vmov 0.0   ;;  %s999_s2 = inlined_call_operand.vmem [shape: f32[128,32], index: 2, kind: input, shape index: {}]   ;;  %s1000_s1 = inlined_call_operand.vmem [shape: f32[128,128], index: 1, kind: input, shape index: {}]   ;;  %s1001_s3 = inlined_call_operand.vmem [shape: f32[32,128], index: 3, kind: input, shape index: {}]   ;;  %s1002_s0 = inlined_call_operand.<no memory space> [shape: f32[1], index: 0, kind: input, shape index: {}]   ;;  %s1003_s4 = inlined_call_operand.vmem [shape: f32[128,128], index: 4, kind: output, shape index: {}]  }
   0x1   :  { %v55_v0 = vld [vmem:[%s999_s2] sm:$0xff]  ;;  %v56_v1 = vld [vmem:[%s999_s2 + $0x8] sm:$0xff]  ;;  %v57_v2 = vld [vmem:[%s999_s2 + $0x10] sm:$0xff]  ;;  %22 = vst.msk [vmem:[#allocation2 + $0x8] sm:$0xff] %vm20_vm0, %v748_v3 }
   0x2   :  { %21 = vst.msk [vmem:[#allocation2] sm:$0xff] %vm20_vm0, %v748_v3  ;;  %23 = vst.msk [vmem:[#allocation2 + $0x10] sm:$0xff] %vm20_vm0, %v748_v3  ;;  %v707_v4 = vpack.c.bf16 %v56_v1, %v55_v0  ;;  %v58_v5 = vld [vmem:[%s999_s2 + $0x18] sm:$0xff]  ;;  %v59_v7 = vld [vmem:[%s999_s2 + $0x20] sm:$0xff] }
   0x3   :  { %24 = vst.msk [vmem:[#allocation2 + $0x18] sm:$0xff] %vm20_vm0, %v748_v3  ;;  %25 = vst.msk [vmem:[#allocation2 + $0x20] sm:$0xff] %vm20_vm0, %v748_v3  ;;  %v711_v6 = vpack.c.bf16 %v58_v5, %v57_v2  ;;  %v60_v8 = vld [vmem:[%s999_s2 + $0x28] sm:$0xff]  ;;  %v37_v10 = vld [vmem:[%s1000_s1] sm:$0xff] }
   0x4   :  { %26 = vst.msk [vmem:[#allocation2 + $0x28] sm:$0xff] %vm20_vm0, %v748_v3  ;;  %27 = vst.msk [vmem:[#allocation2 + $0x30] sm:$0xff] %vm20_vm0, %v748_v3  ;;  %708 = vmatprep.subr.bf16.mxu0 %v707_v4  ;;  %v715_v9 = vpack.c.bf16 %v60_v8, %v59_v7  ;;  %v61_v11 = vld [vmem:[%s999_s2 + $0x30] sm:$0xff]  ;;  %v62_v12 = vld [vmem:[%s999_s2 + $0x38] sm:$0xff]  ;;  %651 = vmatprep.mubr.f32.mxu0 %v37_v10 }
   0x5   :  { %28 = vst.msk [vmem:[#allocation2 + $0x38] sm:$0xff] %vm20_vm0, %v748_v3  ;;  %29 = vst.msk [vmem:[#allocation2 + $0x40] sm:$0xff] %vm20_vm0, %v748_v3  ;;  %710 = vmatpush3.bf16.msra.mxu0 %v707_v4  ;;  %v719_v13 = vpack.c.bf16 %v62_v12, %v61_v11  ;;  %v63_v14 = vld [vmem:[%s999_s2 + $0x40] sm:$0xff]  ;;  %v64_v15 = vld [vmem:[%s999_s2 + $0x48] sm:$0xff] }
   0x6   :  { %30 = vst.msk [vmem:[#allocation2 + $0x48] sm:$0xff] %vm20_vm0, %v748_v3  ;;  %31 = vst.msk [vmem:[#allocation2 + $0x50] sm:$0xff] %vm20_vm0, %v748_v3  ;;  %712 = vmatprep.subr.bf16.mxu0 %v711_v6  ;;  %v723_v16 = vpack.c.bf16 %v64_v15, %v63_v14  ;;  %v65_v17 = vld [vmem:[%s999_s2 + $0x50] sm:$0xff]  ;;  %v66_v18 = vld [vmem:[%s999_s2 + $0x58] sm:$0xff] }
   0x7   :  { %32 = vst.msk [vmem:[#allocation2 + $0x58] sm:$0xff] %vm20_vm0, %v748_v3  ;;  %33 = vst.msk [vmem:[#allocation2 + $0x60] sm:$0xff] %vm20_vm0, %v748_v3  ;;  %v727_v19 = vpack.c.bf16 %v66_v18, %v65_v17  ;;  %v67_v20 = vld [vmem:[%s999_s2 + $0x60] sm:$0xff]  ;;  %v68_v21 = vld [vmem:[%s999_s2 + $0x68] sm:$0xff] }
   0x8   :  { %34 = vst.msk [vmem:[#allocation2 + $0x68] sm:$0xff] %vm20_vm0, %v748_v3  ;;  %35 = vst.msk [vmem:[#allocation2 + $0x70] sm:$0xff] %vm20_vm0, %v748_v3  ;;  %v731_v22 = vpack.c.bf16 %v68_v21, %v67_v20  ;;  %v69_v23 = vld [vmem:[%s999_s2 + $0x70] sm:$0xff]  ;;  %v70_v24 = vld [vmem:[%s999_s2 + $0x78] sm:$0xff] }
   0x9   :  { %36 = vst.msk [vmem:[#allocation2 + $0x78] sm:$0xff] %vm20_vm0, %v748_v3  ;;  %714 = vmatpush3.bf16.msra.mxu0 %v711_v6  ;;  %v735_v25 = vpack.c.bf16 %v70_v24, %v69_v23  ;;  %v38_v26 = vld [vmem:[%s1000_s1 + $0x8] sm:$0xff]  ;;  %v39_v27 = vld [vmem:[%s1000_s1 + $0x10] sm:$0xff]  ;;  %v40_v28 = vld [vmem:[%s1000_s1 + $0x18] sm:$0xff] }
   0xa   :  { %716 = vmatprep.subr.bf16.mxu0 %v715_v9  ;;  %v41_v29 = vld [vmem:[%s1000_s1 + $0x20] sm:$0xff]  ;;  %v42_v30 = vld [vmem:[%s1000_s1 + $0x28] sm:$0xff]  ;;  %v43_v31 = vld [vmem:[%s1000_s1 + $0x30] sm:$0xff] }
   0xb   :  { %v44_v32 = vld [vmem:[%s1000_s1 + $0x38] sm:$0xff]  ;;  %v45_v33 = vld [vmem:[%s1000_s1 + $0x40] sm:$0xff]  ;;  %v46_v34 = vld [vmem:[%s1000_s1 + $0x48] sm:$0xff] }
   0xc   :  { %v47_v35 = vld [vmem:[%s1000_s1 + $0x50] sm:$0xff]  ;;  %v48_v36 = vld [vmem:[%s1000_s1 + $0x58] sm:$0xff]  ;;  %v49_v37 = vld [vmem:[%s1000_s1 + $0x60] sm:$0xff] }
   0xd   :  { %718 = vmatpush3.bf16.msra.mxu0 %v715_v9  ;;  %v50_v38 = vld [vmem:[%s1000_s1 + $0x68] sm:$0xff]  ;;  %v51_v39 = vld [vmem:[%s1000_s1 + $0x70] sm:$0xff]  ;;  %v52_v40 = vld [vmem:[%s1000_s1 + $0x78] sm:$0xff] }
   0xe   :  { %720 = vmatprep.subr.bf16.mxu0 %v719_v13  ;;  %v284_v41 = vld [vmem:[%s1001_s3] sm:$0xff]  ;;  %v285_v42 = vld [vmem:[%s1001_s3 + $0x8] sm:$0xff]  ;;  %v286_v44 = vld [vmem:[%s1001_s3 + $0x10] sm:$0xff] }
   0xf   :  { %v739_v43 = vpack.c.bf16 %v285_v42, %v284_v41  ;;  %v287_v45 = vld [vmem:[%s1001_s3 + $0x18] sm:$0xff]  ;;  %v72_v47 = vld [vmem:[#allocation2 + $0x8] sm:$0xff]  ;;  %v71_v48 = vld [vmem:[#allocation2] sm:$0xff] }
  0x10   :  { %v743_v46 = vpack.c.bf16 %v287_v45, %v286_v44  ;;  %v74_v53 = vld [vmem:[#allocation2 + $0x18] sm:$0xff]  ;;  %v73_v54 = vld [vmem:[#allocation2 + $0x10] sm:$0xff]  ;;  %v76_v59 = vld [vmem:[#allocation2 + $0x28] sm:$0xff] }
  0x11   :  { %722 = vmatpush3.bf16.msra.mxu0 %v719_v13  ;;  %740 = vmatprep.subr.bf16.mxu1 %v739_v43  ;;  %v75_v60 = vld [vmem:[#allocation2 + $0x20] sm:$0xff]  ;;  %v78_v1 = vld [vmem:[#allocation2 + $0x38] sm:$0xff]  ;;  %v77_v3 = vld [vmem:[#allocation2 + $0x30] sm:$0xff] }
  0x12   :  { %724 = vmatprep.subr.bf16.mxu0 %v723_v16  ;;  %742 = vmatpush3.bf16.msra.mxu1 %v739_v43  ;;  %v80_v9 = vld [vmem:[#allocation2 + $0x48] sm:$0xff]  ;;  %v79_v11 = vld [vmem:[#allocation2 + $0x40] sm:$0xff]  ;;  %v82_v17 = vld [vmem:[#allocation2 + $0x58] sm:$0xff] }
  0x13   :  { %744 = vmatprep.subr.bf16.mxu1 %v743_v46 }
  0x15   :  { %726 = vmatpush3.bf16.msra.mxu0 %v723_v16 }
  0x16   :  { %728 = vmatprep.subr.bf16.mxu0 %v727_v19  ;;  %746 = vmatpush3.bf16.msra.mxu1 %v743_v46 }
  0x19   :  { %730 = vmatpush3.bf16.msra.mxu0 %v727_v19  ;;  %v81_v19 = vld [vmem:[#allocation2 + $0x50] sm:$0xff] }
  0x1a   :  { %732 = vmatprep.subr.bf16.mxu0 %v731_v22 }
  0x1d   :  { %734 = vmatpush3.bf16.msra.mxu0 %v731_v22 }
  0x1e   :  { %736 = vmatprep.subr.bf16.mxu0 %v735_v25 }
  0x21   :  { %738 = vmatpush3.bf16.msra.mxu0 %v735_v25  ;;  %v84_v25 = vld [vmem:[#allocation2 + $0x68] sm:$0xff] }
  0x24   :  { %652 = vmatmul.mubr.f32.vlgmr.msra.gmra.mrb[0].mxu0 %v38_v26 }
  0x25   :  { %654 = vmatprep.mubr.f32.mxu0 %v39_v27  ;;  %v83_v27 = vld [vmem:[#allocation2 + $0x60] sm:$0xff] }
  0x28   :  { %655 = vmatmul.mubr.f32.gmra.mrb[2].mxu0 %v40_v28 }
  0x29   :  { %657 = vmatprep.mubr.f32.mxu0 %v41_v29 }
  0x2c   :  { %658 = vmatmul.mubr.f32.gmra.mrb[4].mxu0 %v42_v30 }
  0x2d   :  { %660 = vmatprep.mubr.f32.mxu0 %v43_v31 }
  0x30   :  { %661 = vmatmul.mubr.f32.gmra.mrb[6].mxu0 %v44_v32 }
  0x31   :  { %663 = vmatprep.mubr.f32.mxu0 %v45_v33  ;;  %v86_v33 = vld [vmem:[#allocation2 + $0x78] sm:$0xff] }
  0x34   :  { %664 = vmatmul.mubr.f32.gmra.mrb[8].mxu0 %v46_v34 }
  0x35   :  { %666 = vmatprep.mubr.f32.mxu0 %v47_v35  ;;  %v85_v35 = vld [vmem:[#allocation2 + $0x70] sm:$0xff] }
  0x38   :  { %667 = vmatmul.mubr.f32.gmra.mrb[10].mxu0 %v48_v36 }
  0x39   :  { %669 = vmatprep.mubr.f32.mxu0 %v49_v37 }
  0x3c   :  { %670 = vmatmul.mubr.f32.gmra.mrb[12].mxu0 %v50_v38 }
  0x3d   :  { %672 = vmatprep.mubr.f32.mxu0 %v51_v39 }
  0x40   :  { %673 = vmatmul.mubr.f32.gmra.mrb[14].mxu0 %v52_v40 }
  0xf7   :  { %v653_v49 = vpop.f32.mrb[0].mxu0 }
  0xf8   :  { %v233_v50 = vadd.f32 %v653_v49, %v72_v47  ;;  %v153_v51 = vpop.f32.mrb[1].mxu0  ;;  %v933_v47 = vstv %s1002_s0 }
  0xf9   :  { %v232_v52 = vadd.f32 %v153_v51, %v71_v48 }
  0xfa   :  { %250 = vst.msk [vmem:[#allocation2 + $0x8] sm:$0xff] %vm20_vm0, %v233_v50 }
  0xfb   :  { %249 = vst.msk [vmem:[#allocation2] sm:$0xff] %vm20_vm0, %v232_v52  ;;  %v656_v55 = vpop.f32.mrb[2].mxu0 }
  0xfc   :  { %v235_v56 = vadd.f32 %v656_v55, %v74_v53  ;;  %v163_v57 = vpop.f32.mrb[3].mxu0 }
  0xfd   :  { %v234_v58 = vadd.f32 %v163_v57, %v73_v54 }
  0xfe   :  { %252 = vst.msk [vmem:[#allocation2 + $0x18] sm:$0xff] %vm20_vm0, %v235_v56 }
  0xff   :  { %251 = vst.msk [vmem:[#allocation2 + $0x10] sm:$0xff] %vm20_vm0, %v234_v58  ;;  %v659_v61 = vpop.f32.mrb[4].mxu0 }
 0x100   :  { %v237_v62 = vadd.f32 %v659_v61, %v76_v59  ;;  %v173_v63 = vpop.f32.mrb[5].mxu0 }
 0x101   :  { %v236_v0 = vadd.f32 %v173_v63, %v75_v60  ;;  %v269_v5 = vld [vmem:[#allocation2 + $0x8] sm:$0xff] }
 0x102   :  { %254 = vst.msk [vmem:[#allocation2 + $0x28] sm:$0xff] %vm20_vm0, %v237_v62  ;;  %v268_v2 = vld [vmem:[#allocation2] sm:$0xff] }
 0x103   :  { %253 = vst.msk [vmem:[#allocation2 + $0x20] sm:$0xff] %vm20_vm0, %v236_v0  ;;  %v662_v4 = vpop.f32.mrb[6].mxu0  ;;  %683 = vmatprep.mubr.msk.f32.mxu1 %vm20_vm0, %v268_v2 }
 0x104   :  { %v239_v6 = vadd.f32 %v662_v4, %v78_v1  ;;  %v183_v7 = vpop.f32.mrb[7].mxu0  ;;  %684 = vmatmul.mubr.msk.f32.vlgmr.msra.gmra.mrb[0].mxu1 %vm20_vm0, %v269_v5 }
 0x105   :  { %v238_v8 = vadd.f32 %v183_v7, %v77_v3  ;;  %v271_v13 = vld [vmem:[#allocation2 + $0x18] sm:$0xff] }
 0x106   :  { %256 = vst.msk [vmem:[#allocation2 + $0x38] sm:$0xff] %vm20_vm0, %v239_v6  ;;  %v270_v10 = vld [vmem:[#allocation2 + $0x10] sm:$0xff] }
 0x107   :  { %255 = vst.msk [vmem:[#allocation2 + $0x30] sm:$0xff] %vm20_vm0, %v238_v8  ;;  %v665_v12 = vpop.f32.mrb[8].mxu0  ;;  %686 = vmatprep.mubr.msk.f32.mxu1 %vm20_vm0, %v270_v10 }
 0x108   :  { %v241_v14 = vadd.f32 %v665_v12, %v80_v9  ;;  %v193_v15 = vpop.f32.mrb[9].mxu0  ;;  %687 = vmatmul.mubr.msk.f32.gmra.mrb[2].mxu1 %vm20_vm0, %v271_v13 }
 0x109   :  { %v240_v16 = vadd.f32 %v193_v15, %v79_v11  ;;  %v273_v21 = vld [vmem:[#allocation2 + $0x28] sm:$0xff] }
 0x10a   :  { %258 = vst.msk [vmem:[#allocation2 + $0x48] sm:$0xff] %vm20_vm0, %v241_v14  ;;  %v272_v18 = vld [vmem:[#allocation2 + $0x20] sm:$0xff] }
 0x10b   :  { %257 = vst.msk [vmem:[#allocation2 + $0x40] sm:$0xff] %vm20_vm0, %v240_v16  ;;  %v668_v20 = vpop.f32.mrb[10].mxu0  ;;  %689 = vmatprep.mubr.msk.f32.mxu1 %vm20_vm0, %v272_v18 }
 0x10c   :  { %v243_v22 = vadd.f32 %v668_v20, %v82_v17  ;;  %v203_v23 = vpop.f32.mrb[11].mxu0  ;;  %690 = vmatmul.mubr.msk.f32.gmra.mrb[4].mxu1 %vm20_vm0, %v273_v21 }
 0x10d   :  { %v242_v24 = vadd.f32 %v203_v23, %v81_v19  ;;  %v275_v29 = vld [vmem:[#allocation2 + $0x38] sm:$0xff] }
 0x10e   :  { %260 = vst.msk [vmem:[#allocation2 + $0x58] sm:$0xff] %vm20_vm0, %v243_v22  ;;  %v274_v26 = vld [vmem:[#allocation2 + $0x30] sm:$0xff] }
 0x10f   :  { %259 = vst.msk [vmem:[#allocation2 + $0x50] sm:$0xff] %vm20_vm0, %v242_v24  ;;  %v671_v28 = vpop.f32.mrb[12].mxu0  ;;  %692 = vmatprep.mubr.msk.f32.mxu1 %vm20_vm0, %v274_v26 }
 0x110   :  { %v245_v30 = vadd.f32 %v671_v28, %v84_v25  ;;  %v213_v31 = vpop.f32.mrb[13].mxu0  ;;  %693 = vmatmul.mubr.msk.f32.gmra.mrb[6].mxu1 %vm20_vm0, %v275_v29 }
 0x111   :  { %v244_v32 = vadd.f32 %v213_v31, %v83_v27  ;;  %v277_v37 = vld [vmem:[#allocation2 + $0x48] sm:$0xff] }
 0x112   :  { %262 = vst.msk [vmem:[#allocation2 + $0x68] sm:$0xff] %vm20_vm0, %v245_v30  ;;  %v276_v34 = vld [vmem:[#allocation2 + $0x40] sm:$0xff] }
 0x113   :  { %261 = vst.msk [vmem:[#allocation2 + $0x60] sm:$0xff] %vm20_vm0, %v244_v32  ;;  %v674_v36 = vpop.f32.mrb[14].mxu0  ;;  %695 = vmatprep.mubr.msk.f32.mxu1 %vm20_vm0, %v276_v34 }
 0x114   :  { %v247_v38 = vadd.f32 %v674_v36, %v86_v33  ;;  %v223_v39 = vpop.f32.mrb[15].mxu0  ;;  %696 = vmatmul.mubr.msk.f32.gmra.mrb[8].mxu1 %vm20_vm0, %v277_v37 }
 0x115   :  { %v246_v40 = vadd.f32 %v223_v39, %v85_v35  ;;  %v279_v42 = vld [vmem:[#allocation2 + $0x58] sm:$0xff] }
 0x116   :  { %264 = vst.msk [vmem:[#allocation2 + $0x78] sm:$0xff] %vm20_vm0, %v247_v38  ;;  %v278_v41 = vld [vmem:[#allocation2 + $0x50] sm:$0xff] }
 0x117   :  { %263 = vst.msk [vmem:[#allocation2 + $0x70] sm:$0xff] %vm20_vm0, %v246_v40  ;;  %698 = vmatprep.mubr.msk.f32.mxu1 %vm20_vm0, %v278_v41 }
 0x118   :  { %699 = vmatmul.mubr.msk.f32.gmra.mrb[10].mxu1 %vm20_vm0, %v279_v42 }
 0x119   :  { %v281_v44 = vld [vmem:[#allocation2 + $0x68] sm:$0xff] }
 0x11a   :  { %v280_v43 = vld [vmem:[#allocation2 + $0x60] sm:$0xff] }
 0x11b   :  { %701 = vmatprep.mubr.msk.f32.mxu1 %vm20_vm0, %v280_v43 }
 0x11c   :  { %702 = vmatmul.mubr.msk.f32.gmra.mrb[12].mxu1 %vm20_vm0, %v281_v44 }
 0x11d   :  { %v283_v46 = vld [vmem:[#allocation2 + $0x78] sm:$0xff] }
 0x11e   :  { %v282_v45 = vld [vmem:[#allocation2 + $0x70] sm:$0xff] }
 0x11f   :  { %704 = vmatprep.mubr.msk.f32.mxu1 %vm20_vm0, %v282_v45 }
 0x120   :  { %705 = vmatmul.mubr.msk.f32.gmra.mrb[14].mxu1 %vm20_vm0, %v283_v46 }
 0x1d7   :  { %v685_v48 = vpop.f32.mrb[0].mxu1 }
 0x1d8   :  { %vm483_vm1 = vcmp.ge.f32.partialorder %v685_v48, 0.0  ;;  %v500_v49 = vmul.f32 %v685_v48, %v933_v47  ;;  %v402_v50 = vpop.f32.mrb[1].mxu1 }
 0x1d9   :  { %vm482_vm2 = vcmp.ge.f32.partialorder %v402_v50, 0.0  ;;  %v499_v51 = vmul.f32 %v933_v47, %v402_v50 }
 0x1da   :  { %v516_v52 = vsel %vm483_vm1, %v685_v48, %v500_v49 }
 0x1db   :  { %532 = vst [vmem:[%s1003_s4 + $0x8] sm:$0xff] %v516_v52  ;;  %v515_v53 = vsel %vm482_vm2, %v402_v50, %v499_v51  ;;  %v688_v54 = vpop.f32.mrb[2].mxu1 }
 0x1dc   :  { %531 = vst [vmem:[%s1003_s4] sm:$0xff] %v515_v53  ;;  %vm485_vm3 = vcmp.ge.f32.partialorder %v688_v54, 0.0  ;;  %v502_v55 = vmul.f32 %v688_v54, %v933_v47  ;;  %v412_v56 = vpop.f32.mrb[3].mxu1 }
 0x1dd   :  { %vm484_vm4 = vcmp.ge.f32.partialorder %v412_v56, 0.0  ;;  %v501_v57 = vmul.f32 %v933_v47, %v412_v56 }
 0x1de   :  { %v518_v58 = vsel %vm485_vm3, %v688_v54, %v502_v55 }
 0x1df   :  { %534 = vst [vmem:[%s1003_s4 + $0x18] sm:$0xff] %v518_v58  ;;  %v517_v59 = vsel %vm484_vm4, %v412_v56, %v501_v57  ;;  %v691_v60 = vpop.f32.mrb[4].mxu1 }
 0x1e0   :  { %533 = vst [vmem:[%s1003_s4 + $0x10] sm:$0xff] %v517_v59  ;;  %vm487_vm5 = vcmp.ge.f32.partialorder %v691_v60, 0.0  ;;  %v504_v61 = vmul.f32 %v691_v60, %v933_v47  ;;  %v422_v62 = vpop.f32.mrb[5].mxu1 }
 0x1e1   :  { %vm486_vm6 = vcmp.ge.f32.partialorder %v422_v62, 0.0  ;;  %v503_v63 = vmul.f32 %v933_v47, %v422_v62 }
 0x1e2   :  { %v520_v0 = vsel %vm487_vm5, %v691_v60, %v504_v61 }
 0x1e3   :  { %536 = vst [vmem:[%s1003_s4 + $0x28] sm:$0xff] %v520_v0  ;;  %v519_v1 = vsel %vm486_vm6, %v422_v62, %v503_v63  ;;  %v694_v2 = vpop.f32.mrb[6].mxu1 }
 0x1e4   :  { %535 = vst [vmem:[%s1003_s4 + $0x20] sm:$0xff] %v519_v1  ;;  %vm489_vm7 = vcmp.ge.f32.partialorder %v694_v2, 0.0  ;;  %v506_v3 = vmul.f32 %v694_v2, %v933_v47  ;;  %v432_v4 = vpop.f32.mrb[7].mxu1 }
 0x1e5   :  { %vm488_vm8 = vcmp.ge.f32.partialorder %v432_v4, 0.0  ;;  %v505_v5 = vmul.f32 %v933_v47, %v432_v4 }
 0x1e6   :  { %v522_v6 = vsel %vm489_vm7, %v694_v2, %v506_v3 }
 0x1e7   :  { %538 = vst [vmem:[%s1003_s4 + $0x38] sm:$0xff] %v522_v6  ;;  %v521_v7 = vsel %vm488_vm8, %v432_v4, %v505_v5  ;;  %v697_v8 = vpop.f32.mrb[8].mxu1 }
 0x1e8   :  { %537 = vst [vmem:[%s1003_s4 + $0x30] sm:$0xff] %v521_v7  ;;  %vm491_vm9 = vcmp.ge.f32.partialorder %v697_v8, 0.0  ;;  %v508_v9 = vmul.f32 %v697_v8, %v933_v47  ;;  %v442_v10 = vpop.f32.mrb[9].mxu1 }
 0x1e9   :  { %vm490_vm10 = vcmp.ge.f32.partialorder %v442_v10, 0.0  ;;  %v507_v11 = vmul.f32 %v933_v47, %v442_v10 }
 0x1ea   :  { %v524_v12 = vsel %vm491_vm9, %v697_v8, %v508_v9 }
 0x1eb   :  { %540 = vst [vmem:[%s1003_s4 + $0x48] sm:$0xff] %v524_v12  ;;  %v523_v13 = vsel %vm490_vm10, %v442_v10, %v507_v11  ;;  %v700_v14 = vpop.f32.mrb[10].mxu1 }
 0x1ec   :  { %539 = vst [vmem:[%s1003_s4 + $0x40] sm:$0xff] %v523_v13  ;;  %vm493_vm11 = vcmp.ge.f32.partialorder %v700_v14, 0.0  ;;  %v510_v15 = vmul.f32 %v700_v14, %v933_v47  ;;  %v452_v16 = vpop.f32.mrb[11].mxu1 }
 0x1ed   :  { %vm492_vm12 = vcmp.ge.f32.partialorder %v452_v16, 0.0  ;;  %v509_v17 = vmul.f32 %v933_v47, %v452_v16 }
 0x1ee   :  { %v526_v18 = vsel %vm493_vm11, %v700_v14, %v510_v15 }
 0x1ef   :  { %542 = vst [vmem:[%s1003_s4 + $0x58] sm:$0xff] %v526_v18  ;;  %v525_v19 = vsel %vm492_vm12, %v452_v16, %v509_v17  ;;  %v703_v20 = vpop.f32.mrb[12].mxu1 }
 0x1f0   :  { %541 = vst [vmem:[%s1003_s4 + $0x50] sm:$0xff] %v525_v19  ;;  %vm495_vm13 = vcmp.ge.f32.partialorder %v703_v20, 0.0  ;;  %v512_v21 = vmul.f32 %v703_v20, %v933_v47  ;;  %v462_v22 = vpop.f32.mrb[13].mxu1 }
 0x1f1   :  { %vm494_vm14 = vcmp.ge.f32.partialorder %v462_v22, 0.0  ;;  %v511_v23 = vmul.f32 %v933_v47, %v462_v22 }
 0x1f2   :  { %v528_v24 = vsel %vm495_vm13, %v703_v20, %v512_v21 }
 0x1f3   :  { %544 = vst [vmem:[%s1003_s4 + $0x68] sm:$0xff] %v528_v24  ;;  %v527_v25 = vsel %vm494_vm14, %v462_v22, %v511_v23  ;;  %v706_v26 = vpop.f32.mrb[14].mxu1 }
 0x1f4   :  { %543 = vst [vmem:[%s1003_s4 + $0x60] sm:$0xff] %v527_v25  ;;  %vm497_vm15 = vcmp.ge.f32.partialorder %v706_v26, 0.0  ;;  %v514_v27 = vmul.f32 %v706_v26, %v933_v47  ;;  %v472_v28 = vpop.f32.mrb[15].mxu1 }
 0x1f5   :  { %vm496_vm0 = vcmp.ge.f32.partialorder %v472_v28, 0.0  ;;  %v513_v29 = vmul.f32 %v933_v47, %v472_v28 }
 0x1f6   :  { %v530_v30 = vsel %vm497_vm15, %v706_v26, %v514_v27 }
 0x1f7   :  { %546 = vst [vmem:[%s1003_s4 + $0x78] sm:$0xff] %v530_v30  ;;  %v529_v31 = vsel %vm496_vm0, %v472_v28, %v513_v29 }
 0x1f8   :  { %545 = vst [vmem:[%s1003_s4 + $0x70] sm:$0xff] %v529_v31 }

</bundles_post_ra>
